<compile_context>
chip_gen: v7x
topology: tpu7x:2x2x1
jax: 0.10.0
libtpu: 0.0.40
codegen_flags: <defaults>
</compile_context>

<pallas_src>
import functools
import math

import jax
import jax.numpy as jnp
from jax import lax
from jax.experimental import pallas as pl
from jax.experimental.pallas import tpu as pltpu


def _mlp_kernel(*refs, num_hidden_layers):
    """Fused MLP forward.

    refs = (x_ref,                                  # (bt, in)    matmul dtype
            w1_ref, b1_ref, ..., wL_ref, bL_ref,    # W (in,out) matmul dtype, b (1,out) f32
            wo_t_ref, bo_ref,                       # W^T (out,H) matmul dtype, b (out,1) f32
            o_ref)                                  # (out, bt)   lane-dense output
    """
    x_ref = refs[0]
    o_ref = refs[-1]
    param_refs = refs[1:-1]

    h = x_ref[...]  # (bt, in) in the matmul dtype (bf16 by default)
    # Hidden LangyBlocks: Linear -> ReLU -> Dropout(identity)
    for i in range(num_hidden_layers):
        w = param_refs[2 * i][...]        # (in, H)  matmul dtype
        b = param_refs[2 * i + 1][...]    # (1, H)   f32
        z = jnp.dot(h, w, preferred_element_type=jnp.float32) + b
        z = jnp.maximum(z, 0.0)           # ReLU kept in f32 vregs (v5e-safe)
        # Dropout with p_dropout=0 / eval mode -> identity
        h = z.astype(w.dtype)             # downcast only at the next MXU operand

    # Output Linear(hidden_nodes -> out_features), written lane-dense:
    # (out, H) . (bt, H)^T -> (out, bt)  => batch lands on the lane axis.
    wo_t = param_refs[-2][...]            # (out, H)  matmul dtype
    bo = param_refs[-1][...]              # (out, 1)  f32
    out_t = lax.dot_general(
        wo_t, h,
        dimension_numbers=(((1,), (1,)), ((), ())),
        preferred_element_type=jnp.float32,
    ) + bo
    o_ref[...] = out_t.astype(o_ref.dtype)


def _default_batch_tile(batch):
    """Prefer 512/1024-row tiles with >= 2 grid steps.

    Big enough to fill the MXU M dimension and amortize the ~0.35 us per-step
    overhead; small enough that the live (bt, H) f32 activation mostly stays in
    vregs; >= 2 steps gives DMA/compute overlap and v7x megacore sharding.
    """
    for tile in (512, 1024, 256, 128):
        if batch % tile == 0 and batch // tile >= 2:
            return tile
    return batch


def langynet_forward(x, params, *, batch_tile=None, matmul_dtype=jnp.bfloat16):
    """Run the LangyNet forward pass as one fused Pallas kernel.

    x:      (batch, 10) float32
    params: list of (W, b) with W shaped (in, out), b shaped (1, out).
            Last pair is the output layer (hidden_nodes, out_features).
    """
    batch, in_features = x.shape
    num_hidden_layers = len(params) - 1
    out_features = params[-1][0].shape[1]
    out_dtype = x.dtype

    if batch_tile is None:
        batch_tile = _default_batch_tile(batch)
    assert batch % batch_tile == 0, (batch, batch_tile)
    # Layout rules: x block sublane dim must be a multiple of 8 (or full), and the
    # lane-dense output block wants a multiple of 128 lanes (or the full batch).
    assert batch_tile == batch or batch_tile % 128 == 0, (
        "batch_tile must be a multiple of 128 (lane-dense output) or equal batch")

    # MXU operands (x, weights) in the matmul dtype; biases stay f32 so the bias
    # add / ReLU run in f32 (v5e has no bf16 VALU).
    x_in = x.astype(matmul_dtype)

    kernel = functools.partial(_mlp_kernel, num_hidden_layers=num_hidden_layers)

    flat_params = []
    in_specs = [
        # x: tiled along batch, full (tiny) feature dim.
        pl.BlockSpec((batch_tile, in_features), lambda i: (i, 0)),
    ]
    for (w, b) in params[:-1]:
        w = w.astype(matmul_dtype)
        b = b.astype(jnp.float32)
        flat_params.extend([w, b])
        # Constant index_map -> resident across grid steps (no re-DMA).
        in_specs.append(pl.BlockSpec(w.shape, lambda i: (0, 0)))
        in_specs.append(pl.BlockSpec(b.shape, lambda i: (0, 0)))

    wo, bo = params[-1]
    wo_t = wo.T.astype(matmul_dtype)                       # (out_features, hidden)
    bo_col = bo.reshape(out_features, 1).astype(jnp.float32)
    flat_params.extend([wo_t, bo_col])
    in_specs.append(pl.BlockSpec(wo_t.shape, lambda i: (0, 0)))
    in_specs.append(pl.BlockSpec(bo_col.shape, lambda i: (0, 0)))

    # Lane-dense output slab: (out_features, batch), batch on the lane axis.
    out_specs = pl.BlockSpec((out_features, batch_tile), lambda i: (0, i))
    grid = (batch // batch_tile,)

    flops = 2 * batch * sum(int(w.shape[0]) * int(w.shape[1]) for (w, _) in params)
    bytes_accessed = (
        int(x_in.nbytes)
        + sum(int(a.nbytes) for a in flat_params)
        + batch * out_features * jnp.dtype(out_dtype).itemsize
    )

    out_t = pl.pallas_call(
        kernel,
        out_shape=jax.ShapeDtypeStruct((out_features, batch), out_dtype),
        grid_spec=pltpu.PrefetchScalarGridSpec(
            num_scalar_prefetch=0,
            grid=grid,
            in_specs=in_specs,
            out_specs=out_specs,
        ),
        compiler_params=pltpu.CompilerParams(
            dimension_semantics=("parallel",),
        ),
        cost_estimate=pl.CostEstimate(
            flops=flops, transcendentals=0, bytes_accessed=bytes_accessed),
    )(x_in, *flat_params)

    # Layout plumbing back to the torch-facing (batch, out_features) shape.
    return out_t.T


def init_langynet_params(key, hidden_layers, hidden_nodes,
                         input_features=10, output_features=1):
    """Deterministic init mimicking nn.Linear default (U[-1/sqrt(in), 1/sqrt(in)]).

    Weights are stored transposed: (in_features, out_features).
    Biases are stored as (1, out_features).
    """
    params = []
    dims = [input_features] + [hidden_nodes] * hidden_layers + [output_features]
    for i in range(len(dims) - 1):
        fan_in, fan_out = dims[i], dims[i + 1]
        key, kw, kb = jax.random.split(key, 3)
        bound = 1.0 / math.sqrt(fan_in)
        w = jax.random.uniform(kw, (fan_in, fan_out), jnp.float32, -bound, bound)
        b = jax.random.uniform(kb, (1, fan_out), jnp.float32, -bound, bound)
        params.append((w, b))
    return params


def langynet_reference(x, params, matmul_dtype=jnp.float32):
    """Pure-JAX reference.  matmul_dtype mirrors the kernel's MXU operand dtype."""
    h = x.astype(matmul_dtype)
    for (w, b) in params[:-1]:
        z = jnp.dot(h, w.astype(matmul_dtype), preferred_element_type=jnp.float32) + b
        h = jnp.maximum(z, 0.0).astype(matmul_dtype)
    wo, bo = params[-1]
    return jnp.dot(h, wo.astype(matmul_dtype), preferred_element_type=jnp.float32) + bo


if __name__ == "__main__":
    hidden_layers = 2
    hidden_nodes = 32
    input_features = 10

    key = jax.random.PRNGKey(0)
    key, kx_small, kx_big = jax.random.split(key, 3)
    params = init_langynet_params(key, hidden_layers, hidden_nodes,
                                  input_features=input_features, output_features=1)

    # 1) Small batch (batch_tile == batch, grid of 1), exact f32 MXU path.
    x_small = jax.random.normal(kx_small, (8, input_features), dtype=jnp.float32)
    out_small = jax.block_until_ready(
        langynet_forward(x_small, params, matmul_dtype=jnp.float32))
    ref_small = langynet_reference(x_small, params)
    assert out_small.shape == (8, 1), out_small.shape
    assert jnp.allclose(out_small, ref_small, atol=1e-5, rtol=1e-5)

    # 2) Larger batch exercising the tiled / multi-step "parallel" path
    #    (batch=1024 -> batch_tile=512, grid=(2,)), bf16 MXU operands.
    x_big = jax.random.normal(kx_big, (1024, input_features), dtype=jnp.float32)
    out_big = jax.block_until_ready(langynet_forward(x_big, params))
    assert out_big.shape == (1024, 1), out_big.shape
    ref_big_bf16 = langynet_reference(x_big, params, matmul_dtype=jnp.bfloat16)
    assert jnp.allclose(out_big, ref_big_bf16, atol=1e-2, rtol=1e-2)
    ref_big_f32 = langynet_reference(x_big, params)
    assert jnp.allclose(out_big, ref_big_f32, atol=1e-1, rtol=1e-1)

    print("KERNEL_OK")
</pallas_src>

<mosaic_0001>
module attributes {stable_mosaic.version = 11 : i64} {
  func.func @_mlp_kernel(%arg0: i32, %arg1: memref<8x10xf32, #tpu.memory_space<vmem>>, %arg2: memref<10x32xf32, #tpu.memory_space<vmem>>, %arg3: memref<1x32xf32, #tpu.memory_space<vmem>>, %arg4: memref<32x32xf32, #tpu.memory_space<vmem>>, %arg5: memref<1x32xf32, #tpu.memory_space<vmem>>, %arg6: memref<1x32xf32, #tpu.memory_space<vmem>>, %arg7: memref<1x1xf32, #tpu.memory_space<vmem>>, %arg8: memref<1x8xf32, #tpu.memory_space<vmem>>) attributes {dimension_semantics = [#tpu.dimension_semantics<parallel>], iteration_bounds = array<i64: 1>, scalar_prefetch = 0 : i64, scratch_operands = 0 : i64, tpu.core_type = #tpu.core_type<tc>, window_params = [{transform_indices = @transform_0, window_bounds = array<i64: 8, 10>}, {pipeline_mode = #tpu.pipeline_mode<synchronous>, transform_indices = @transform_1, window_bounds = array<i64: 10, 32>}, {pipeline_mode = #tpu.pipeline_mode<synchronous>, transform_indices = @transform_2, window_bounds = array<i64: 1, 32>}, {pipeline_mode = #tpu.pipeline_mode<synchronous>, transform_indices = @transform_3, window_bounds = array<i64: 32, 32>}, {pipeline_mode = #tpu.pipeline_mode<synchronous>, transform_indices = @transform_4, window_bounds = array<i64: 1, 32>}, {pipeline_mode = #tpu.pipeline_mode<synchronous>, transform_indices = @transform_5, window_bounds = array<i64: 1, 32>}, {pipeline_mode = #tpu.pipeline_mode<synchronous>, transform_indices = @transform_6, window_bounds = array<i64: 1, 1>}, {transform_indices = @transform_7, window_bounds = array<i64: 1, 8>}]} {
    %c0 = arith.constant 0 : index
    %c0_0 = arith.constant 0 : index
    %0 = vector.load %arg1[%c0, %c0_0] : memref<8x10xf32, #tpu.memory_space<vmem>>, vector<8x10xf32>
    %c0_1 = arith.constant 0 : index
    %c0_2 = arith.constant 0 : index
    %1 = vector.load %arg2[%c0_1, %c0_2] : memref<10x32xf32, #tpu.memory_space<vmem>>, vector<10x32xf32>
    %c0_3 = arith.constant 0 : index
    %c0_4 = arith.constant 0 : index
    %2 = vector.load %arg3[%c0_3, %c0_4] : memref<1x32xf32, #tpu.memory_space<vmem>>, vector<1x32xf32>
    %cst = arith.constant dense<0.000000e+00> : vector<8x32xf32>
    %3 = tpu.matmul %0, %1, %cst {dimension_numbers = #tpu.dot_dimension_numbers<[1], [0], [0], [1], [0, 0, 1, 1], [], []>} : vector<8x10xf32>, vector<10x32xf32>, vector<8x32xf32> -> vector<8x32xf32>
    %4 = vector.broadcast %2 : vector<1x32xf32> to vector<8x32xf32>
    %5 = arith.addf %3, %4 : vector<8x32xf32>
    %cst_5 = arith.constant 0.000000e+00 : f32
    %6 = vector.broadcast %cst_5 : f32 to vector<8x32xf32>
    %7 = arith.maximumf %5, %6 : vector<8x32xf32>
    %c0_6 = arith.constant 0 : index
    %c0_7 = arith.constant 0 : index
    %8 = vector.load %arg4[%c0_6, %c0_7] : memref<32x32xf32, #tpu.memory_space<vmem>>, vector<32x32xf32>
    %c0_8 = arith.constant 0 : index
    %c0_9 = arith.constant 0 : index
    %9 = vector.load %arg5[%c0_8, %c0_9] : memref<1x32xf32, #tpu.memory_space<vmem>>, vector<1x32xf32>
    %cst_10 = arith.constant dense<0.000000e+00> : vector<8x32xf32>
    %10 = tpu.matmul %7, %8, %cst_10 {dimension_numbers = #tpu.dot_dimension_numbers<[1], [0], [0], [1], [0, 0, 1, 1], [], []>} : vector<8x32xf32>, vector<32x32xf32>, vector<8x32xf32> -> vector<8x32xf32>
    %11 = vector.broadcast %9 : vector<1x32xf32> to vector<8x32xf32>
    %12 = arith.addf %10, %11 : vector<8x32xf32>
    %cst_11 = arith.constant 0.000000e+00 : f32
    %13 = vector.broadcast %cst_11 : f32 to vector<8x32xf32>
    %14 = arith.maximumf %12, %13 : vector<8x32xf32>
    %c0_12 = arith.constant 0 : index
    %c0_13 = arith.constant 0 : index
    %15 = vector.load %arg6[%c0_12, %c0_13] : memref<1x32xf32, #tpu.memory_space<vmem>>, vector<1x32xf32>
    %c0_14 = arith.constant 0 : index
    %c0_15 = arith.constant 0 : index
    %16 = vector.load %arg7[%c0_14, %c0_15] : memref<1x1xf32, #tpu.memory_space<vmem>>, vector<1x1xf32>
    %cst_16 = arith.constant dense<0.000000e+00> : vector<1x8xf32>
    %17 = tpu.matmul %15, %14, %cst_16 {dimension_numbers = #tpu.dot_dimension_numbers<[1], [1], [0], [0], [0, 0, 1, 0], [], []>} : vector<1x32xf32>, vector<8x32xf32>, vector<1x8xf32> -> vector<1x8xf32>
    %18 = vector.broadcast %16 : vector<1x1xf32> to vector<1x8xf32>
    %19 = arith.addf %17, %18 : vector<1x8xf32>
    %c0_17 = arith.constant 0 : index
    %c0_18 = arith.constant 0 : index
    %20 = vector.load %arg8[%c0_17, %c0_18] : memref<1x8xf32, #tpu.memory_space<vmem>>, vector<1x8xf32>
    tpu.vector_store %arg8[%c0_17, %c0_18], %19 {strides = array<i32>} : memref<1x8xf32, #tpu.memory_space<vmem>>, vector<1x8xf32>,
    return
  }
  func.func @transform_0(%arg0: i32) -> (i32, i32) {
    %c0_i32 = arith.constant 0 : i32
    %c0_i32_0 = arith.constant 0 : i32
    return %arg0, %c0_i32 : i32, i32
  }
  func.func @transform_1(%arg0: i32) -> (i32, i32) {
    %c0_i32 = arith.constant 0 : i32
    %c0_i32_0 = arith.constant 0 : i32
    %c0_i32_1 = arith.constant 0 : i32
    return %c0_i32, %c0_i32_0 : i32, i32
  }
  func.func @transform_2(%arg0: i32) -> (i32, i32) {
    %c0_i32 = arith.constant 0 : i32
    %c0_i32_0 = arith.constant 0 : i32
    %c0_i32_1 = arith.constant 0 : i32
    return %c0_i32, %c0_i32_0 : i32, i32
  }
  func.func @transform_3(%arg0: i32) -> (i32, i32) {
    %c0_i32 = arith.constant 0 : i32
    %c0_i32_0 = arith.constant 0 : i32
    %c0_i32_1 = arith.constant 0 : i32
    return %c0_i32, %c0_i32_0 : i32, i32
  }
  func.func @transform_4(%arg0: i32) -> (i32, i32) {
    %c0_i32 = arith.constant 0 : i32
    %c0_i32_0 = arith.constant 0 : i32
    %c0_i32_1 = arith.constant 0 : i32
    return %c0_i32, %c0_i32_0 : i32, i32
  }
  func.func @transform_5(%arg0: i32) -> (i32, i32) {
    %c0_i32 = arith.constant 0 : i32
    %c0_i32_0 = arith.constant 0 : i32
    %c0_i32_1 = arith.constant 0 : i32
    return %c0_i32, %c0_i32_0 : i32, i32
  }
  func.func @transform_6(%arg0: i32) -> (i32, i32) {
    %c0_i32 = arith.constant 0 : i32
    %c0_i32_0 = arith.constant 0 : i32
    %c0_i32_1 = arith.constant 0 : i32
    return %c0_i32, %c0_i32_0 : i32, i32
  }
  func.func @transform_7(%arg0: i32) -> (i32, i32) {
    %c0_i32 = arith.constant 0 : i32
    %c0_i32_0 = arith.constant 0 : i32
    return %c0_i32, %arg0 : i32, i32
  }
}

</mosaic_0001>

<bundles_post_ra>
// kernel: tpu_custom_call.1
= control target key start
LH: loop header
LB: loop body
LE: loop exit
PB: predicated region body
PF: predicated region fallthrough
CT: control target
= control target key end

     0   :  { %s624_s0 = inlined_call_operand.hbm [shape: f32[8,10], index: 0, kind: input, shape index: {}]   ;;  %s625_s1 = inlined_call_operand.hbm [shape: f32[10,32], index: 1, kind: input, shape index: {}]   ;;  %s626_s2 = inlined_call_operand.vmem [shape: f32[1,32], index: 2, kind: input, shape index: {}]   ;;  %s627_s3 = inlined_call_operand.hbm [shape: f32[32,32], index: 3, kind: input, shape index: {}]   ;;  %s628_s4 = inlined_call_operand.vmem [shape: f32[1,32], index: 4, kind: input, shape index: {}]   ;;  %s629_s5 = inlined_call_operand.vmem [shape: f32[1,32], index: 5, kind: input, shape index: {}]   ;;  %s630_s6 = inlined_call_operand.<no memory space> [shape: f32[1,1], index: 6, kind: input, shape index: {}]   ;;  %s631_s7 = inlined_call_operand.hbm [shape: f32[1,8], index: 7, kind: output, shape index: {}]  }
   0x1   :  { %v12_v0 = vstv %s630_s6 }
   0x2   :  { %13 = vst [vmem:[#allocation2] sm:$0x1] %v12_v0 }
   0x3   :  { %14 = vsyncpa [#allocation4], 0 }
   0x4   :  { %15 = vsyncpa [#allocation7], 0 }
   0x5   :  { %16 = vsyncpa [#allocation5], 0  ;;  %s504_s26 = smov [#allocation6]   ;;  %s410_s30 = scalar_lea.hbm %s625_s1, 256 }
   0x6   :  { %s32_s27 = sshll.u32 %s504_s26, 4  ;;  %p411_p0 = scmp.ne.s32.totalorder %s625_s1, %s410_s30  ;;  %s33_s27 = int_to_ptr.vmem [resolvable:$true] %s32_s27 }
   0x7   :  { %p414_p1 = scmp.lt.u32.totalorder %s410_s30, %s625_s1 }
   0x9   :  { %p416_p2 = pnand %p414_p1, %p411_p0 }
   0xb   :  { %419 = shalt.err (!%p416_p2)
}
   0xc   :  { %s420_s6 = scalar_lea.vmem %s33_s27, 256  ;;  %p425_p4 = scmp.lt.s32.totalorder %s33_s27, %s33_s27 }
   0xd   :  { %p421_p3 = scmp.ne.s32.totalorder %s33_s27, %s420_s6  ;;  %p426_p5 = scmp.lt.s32.totalorder %s420_s6, %s420_s6 }
   0xf   :  { %p427_p6 = por %p426_p5, %p425_p4 }
  0x11   :  { %p428_p7 = pnand %p427_p6, %p421_p3 }
  0x13   :  { %431 = shalt.err (!%p428_p7)
}
  0x14   :  { %s505_s12 = smov 128   ;;  %s506_s13 = smov 8  }
  0x15   :  { %38 = dma.hbm_to_vmem [thread:$0]  %s625_s1, 256, %s33_s27, [#allocation7], %s505_s12, %s505_s12, %s506_s13  }
  0x16   :  { %s507_s16 = smov [#allocation3]   ;;  %s508_s18 = smov [#allocation8]  }
  0x17   :  { %s23_s17 = sshll.u32 %s507_s16, 4  ;;  %s46_s19 = sshll.u32 %s508_s18, 4  ;;  %s24_s17 = int_to_ptr.vmem [resolvable:$true] %s23_s17  ;;  %s47_s19 = int_to_ptr.vmem [resolvable:$true] %s46_s19 }
  0x18   :  { %s432_s22 = scalar_lea.hbm %s624_s0, 128 }
  0x19   :  { %p433_p8 = scmp.ne.s32.totalorder %s624_s0, %s432_s22  ;;  %p436_p9 = scmp.lt.u32.totalorder %s432_s22, %s624_s0 }
  0x1b   :  { %p438_p10 = pnand %p436_p9, %p433_p8 }
  0x1d   :  { %441 = shalt.err (!%p438_p10)
}
  0x1e   :  { %s442_s1 = scalar_lea.vmem %s24_s17, 128  ;;  %p447_p12 = scmp.lt.s32.totalorder %s24_s17, %s24_s17 }
  0x1f   :  { %p443_p11 = scmp.ne.s32.totalorder %s24_s17, %s442_s1  ;;  %p448_p13 = scmp.lt.s32.totalorder %s442_s1, %s442_s1 }
  0x21   :  { %p449_p0 = por %p448_p13, %p447_p12 }
  0x23   :  { %p450_p1 = pnand %p449_p0, %p443_p11 }
  0x25   :  { %453 = shalt.err (!%p450_p1)
}
  0x26   :  { %26 = dma.hbm_to_vmem [thread:$0]  %s624_s0, 128, %s24_s17, [#allocation4]  }
  0x27   :  { %s454_s8 = scalar_lea.hbm %s627_s3, 512 }
  0x28   :  { %p455_p2 = scmp.ne.s32.totalorder %s627_s3, %s454_s8  ;;  %p458_p3 = scmp.lt.u32.totalorder %s454_s8, %s627_s3 }
  0x2a   :  { %p460_p4 = pnand %p458_p3, %p455_p2 }
  0x2c   :  { %463 = shalt.err (!%p460_p4)
}
  0x2d   :  { %s464_s14 = scalar_lea.vmem %s47_s19, 512  ;;  %p469_p6 = scmp.lt.s32.totalorder %s47_s19, %s47_s19 }
  0x2e   :  { %p465_p5 = scmp.ne.s32.totalorder %s47_s19, %s464_s14  ;;  %p470_p7 = scmp.lt.s32.totalorder %s464_s14, %s464_s14 }
  0x30   :  { %p471_p8 = por %p470_p7, %p469_p6 }
  0x32   :  { %p472_p9 = pnand %p471_p8, %p465_p5 }
  0x34   :  { %475 = shalt.err (!%p472_p9)
}
  0x35   :  { %52 = dma.hbm_to_vmem [thread:$0]  %s627_s3, 512, %s47_s19, [#allocation7], %s505_s12, %s505_s12, %s506_s13  }
  0x36   :  { %498 = dma.done.wait [#allocation4], 128  }
  0x37   :  { %499 = vsyncadd [#allocation4], 4294967168 }
  0x38   :  { %500 = dma.done.wait [#allocation7], 768  }
  0x39   :  { %501 = vsyncadd [#allocation7], 4294966528  ;;  %v509_v1 = vmov 0.0|0.0   ;;  %vm510_vm0 = vmmov 0   ;;  %v511_v2 = vmov 0.0   ;;  %vm82_vm1 = vcmask 1041408  }
  0x3a   :  { %388 = vmatprep.subr.bf16.mxu0 %v509_v1  ;;  %392 = vmatprep.subr.bf16.mxu1 %v509_v1  ;;  %v69_v3 = vld [vmem:[#allocation6] sm:$0xff]  ;;  %v70_v4 = vld [vmem:[#allocation6 + $0x8] sm:$0x3]  ;;  %vm512_vm2 = vmmov 1   ;;  %v157_v6 = vld [vmem:[#allocation8] sm:$0xff]  ;;  %vm78_vm4 = vcmask 80896   ;;  %v250_v26 = vlaneseq }
  0x3b   :  { %369 = vmatprep.mubr.msk.f32.mxu0 %vm510_vm0, %v511_v2  ;;  %380 = vmatprep.mubr.msk.f32.mxu1 %vm510_vm0, %v511_v2  ;;  %vm390_vm3 = vmpackc.low %vm82_vm1, %vm512_vm2  ;;  %v389_v5 = vpack.c.bf16 %v70_v4, %v69_v3  ;;  %v158_v7 = vld [vmem:[#allocation8 + $0x8] sm:$0xff]  ;;  %v159_v10 = vld [vmem:[#allocation8 + $0x10] sm:$0xff]  ;;  %vm168_vm5 = vcmask 261120   ;;  %v513_v19 = vmov 0   ;;  %s514_s18 = smov [#allocation9]   ;;  %vm330_vm6 = vcmask 57344  }
  0x3c   :  { %v393_v8 = vpack.c.bf16 %v158_v7, %v157_v6  ;;  %v68_v9 = vld [vmem:[#allocation3] sm:$0xff]  ;;  %v160_v11 = vld [vmem:[#allocation8 + $0x18] sm:$0xff]  ;;  %v348_v13 = vld [vmem:[%s626_s2] ss:$0 sm:$0xff]  ;;  %409 = vset.pattern.permute.xlu0 %v513_v19  ;;  %v251_v27 = vshrl.u32 %v250_v26, 7  ;;  %s338_s19 = sshll.u32 %s514_s18, 4  ;;  %s339_s19 = int_to_ptr.vmem [resolvable:$true] %s338_s19 }
  0x3d   :  { %391 = vmatpush3.bf16.msk.msra.mxu0 %vm390_vm3, %v389_v5  ;;  %v396_v12 = vpack.c.bf16 %v160_v11, %v159_v10  ;;  %v244_v18 = vld [vmem:[#allocation2] sm:$0x1]  ;;  %s480_s20 = scalar_lea.vmem %s339_s19, 32  ;;  %p481_p11 = scmp.lt.s32.totalorder %s339_s19, %s339_s19 }
  0x3e   :  { %394 = vmatpush3.bf16.msra.mxu1 %v393_v8  ;;  %383 = vmatprep.subr.mxu0 %v511_v2  ;;  %v351_v20 = vld [vmem:[%s628_s4] ss:$0 sm:$0xff]  ;;  %v252_v28 = vsub.s32 0, %v251_v27  ;;  %s476_s4 = scalar_lea.vmem %s339_s19, 16 }
  0x3f   :  { %395 = vmatprep.subr.bf16.mxu1 %v509_v1  ;;  %247 = vperm.xlu0 %409, %v244_v18   ;;  %v243_v25 = vld [vmem:[%s629_s5] sm:$0x1]  ;;  %p477_p10 = scmp.ne.s32.totalorder %s339_s19, %s476_s4  ;;  %p482_p12 = scmp.lt.s32.totalorder %s480_s20, %s476_s4 }
  0x40   :  { %370 = vmatmul.mubr.msk.f32.vlgmr.msra.gmra.mrb[0].mxu0 %vm78_vm4, %v68_v9 }
  0x41   :  { %385 = vmatprep.mubr.msk.f32.mxu0 %vm510_vm0, %v511_v2  ;;  %p483_p13 = por %p482_p12, %p481_p11 }
  0x42   :  { %397 = vmatpush3.bf16.msra.mxu1 %v396_v12 }
  0x43   :  { %p484_p0 = pnand %p483_p13, %p477_p10 }
  0xbe   :  { %v248_v29 = vpop.permute.xlu0 %247 }
  0xbf   :  { %v253_v30 = vrot.slane %v248_v29, %v252_v28 }
 0x113   :  { %v152_v14 = vpop.f32.mrb[0].mxu0 }
 0x114   :  { %v153_v15 = vadd.f32 %v348_v13, %v152_v14  ;;  %v371_v16 = vpop.f32.mrb[1].mxu0 }
 0x116   :  { %v156_v17 = vmax.f32 %v153_v15, 0.0 }
 0x118   :  { %381 = vmatmul.mubr.msk.f32.vlgmr.msra.gmra.mrb[0].mxu1 %vm168_vm5, %v156_v17 }
 0x1eb   :  { %v238_v21 = vpop.f32.mrb[0].mxu1 }
 0x1ec   :  { %v239_v22 = vadd.f32 %v351_v20, %v238_v21  ;;  %v382_v23 = vpop.f32.mrb[1].mxu1 }
 0x1ee   :  { %v242_v24 = vmax.f32 %v239_v22, 0.0 }
 0x1f0   :  { %384 = vmatpush3.xpose.msk.msra.mxu0 %vm168_vm5, %v242_v24 }
 0x1f3   :  { %386 = vmatmul.mubr.msk.f32.vlgmr.msra.gmra.mrb[2].mxu0 %vm168_vm5, %v243_v25 }
 0x2c6   :  { %v326_v31 = vpop.f32.mrb[2].mxu0 }
 0x2c7   :  { %v327_v32 = vadd.f32 %v326_v31, %v253_v30  ;;  %v387_v33 = vpop.f32.mrb[3].mxu0 }
 0x2c9   :  { %331 = vst.msk [vmem:[#allocation9] sm:$0x1] %vm330_vm6, %v327_v32 }
 0x2ca   :  { %487 = shalt.err (!%p484_p0)
}
 0x2cb   :  { %s488_s22 = scalar_lea.hbm %s631_s7, 16 }
 0x2cc   :  { %p489_p1 = scmp.ne.s32.totalorder %s631_s7, %s488_s22  ;;  %p492_p2 = scmp.lt.u32.totalorder %s488_s22, %s631_s7 }
 0x2ce   :  { %p494_p3 = pnand %p492_p2, %p489_p1 }
 0x2d0   :  { %497 = shalt.err (!%p494_p3)
}
 0x2d1   :  { %341 = dma.vmem_to_hbm [thread:$0]  %s339_s19, 16, %s631_s7, [#allocation5]  }
 0x2d2   :  { %502 = dma.done.wait [#allocation5], 16  }
 0x2d3   :  { %503 = vsyncadd [#allocation5], 4294967280 }
 0x2d4   :  { %345 = vsyncpa [#allocation4], 1 }
 0x2d5   :  { %346 = vsyncpa [#allocation7], 1 }
 0x2d6   :  { %347 = vsyncpa [#allocation5], 1 }

</bundles_post_ra>
